<compile_context>
chip_gen: v5e
topology: v5e:2x2
jax: 0.10.0
libtpu: 0.0.40
codegen_flags: <defaults>
</compile_context>

<pallas_src>
import math
import functools

import jax
import jax.numpy as jnp
import numpy as np
from jax import lax
from jax.experimental import pallas as pl
from jax.experimental.pallas import tpu as pltpu

EPS = 1e-5


def _layer_norm(h, gamma, beta):
    mu = jnp.mean(h, axis=-1, keepdims=True)
    var = jnp.mean((h - mu) ** 2, axis=-1, keepdims=True)
    return (h - mu) * lax.rsqrt(var + EPS) * gamma + beta


def _encoder_block_kernel(n_head, tq, tkv,
                          x_ref, wqkv_ref, bqkv_ref, wo_ref, bo_ref,
                          w1_ref, b1_ref, w2_ref, b2_ref,
                          g1_ref, be1_ref, g2_ref, be2_ref,
                          o_ref, kv_ref, ao_ref):
    # TODO(synk): attention mask (only the mask=None path of the PyTorch module).
    L, D = x_ref.shape
    dk = D // n_head
    scale = 1.0 / math.sqrt(dk)
    qt = pl.program_id(1)

    # ---- once per batch element: project K/V for the full sequence ----
    # Chunked over rows to bound the qt==0 peak live-set; written head-major so
    # the per-head reads below are plain leading-axis indexing.
    @pl.when(qt == 0)
    def _():
        @pl.loop(0, L // tkv)
        def _(c):
            r = pl.multiple_of(c * tkv, tkv)
            xc = x_ref[pl.ds(r, tkv), :].astype(jnp.bfloat16)            # (tkv, D)
            kc = jnp.dot(xc, wqkv_ref[:, D:2 * D],
                         preferred_element_type=jnp.float32) + bqkv_ref[:, D:2 * D]
            vc = jnp.dot(xc, wqkv_ref[:, 2 * D:3 * D],
                         preferred_element_type=jnp.float32) + bqkv_ref[:, 2 * D:3 * D]
            for h in range(n_head):
                lo = h * dk
                kv_ref[0, h, pl.ds(r, tkv), :] = kc[:, lo:lo + dk].astype(jnp.bfloat16)
                kv_ref[1, h, pl.ds(r, tkv), :] = vc[:, lo:lo + dk].astype(jnp.bfloat16)

    # ---- this step's query tile ----
    start = pl.multiple_of(qt * tq, tq)
    x_t = x_ref[pl.ds(start, tq), :]                                     # (tq, D) f32 residual
    x_tb = x_t.astype(jnp.bfloat16)

    # 1/sqrt(dk) folded into q once (tq*D multiplies, not n_head*tq*L).
    q = (jnp.dot(x_tb, wqkv_ref[:, 0:D],
                 preferred_element_type=jnp.float32) + bqkv_ref[:, 0:D]) * scale

    # ---- per-head attention; head outputs go into the (tq, D) bf16 scratch ----
    for h in range(n_head):
        lo = h * dk
        qh = q[:, lo:lo + dk].astype(jnp.bfloat16)                       # (tq, dk)
        kh = kv_ref[0, h]                                                # (L, dk) bf16 (Ref slice)
        vh = kv_ref[1, h]                                                # (L, dk) bf16
        # contract dk of both operands directly (no explicit K transpose)
        s = lax.dot_general(qh, kh, (((1,), (1,)), ((), ())),
                            preferred_element_type=jnp.float32)          # (tq, L)
        s = s - jnp.max(s, axis=-1, keepdims=True)
        p = jnp.exp(s)
        p = p * pl.reciprocal(jnp.sum(p, axis=-1, keepdims=True), approx=True)
        oh = jnp.dot(p.astype(jnp.bfloat16), vh,
                     preferred_element_type=jnp.float32)                 # (tq, dk)
        ao_ref[:, lo:lo + dk] = oh.astype(jnp.bfloat16)

    # Single full-depth output projection: (tq, D) x (D, D), full MXU depth.
    attn = jnp.dot(ao_ref[...], wo_ref[...],
                   preferred_element_type=jnp.float32) + bo_ref[...]

    # ---- residual + LayerNorm1 (f32) ----
    y1 = _layer_norm(x_t + attn, g1_ref[...], be1_ref[...])

    # ---- FeedForward (bf16 matmuls, f32 accumulation / elementwise) ----
    f = jnp.dot(y1.astype(jnp.bfloat16), w1_ref[...],
                preferred_element_type=jnp.float32) + b1_ref[...]
    f = jnp.maximum(f, 0.0)
    f = jnp.dot(f.astype(jnp.bfloat16), w2_ref[...],
                preferred_element_type=jnp.float32) + b2_ref[...]

    # ---- residual + LayerNorm2 (f32) ----
    o_ref[...] = _layer_norm(y1 + f, g2_ref[...], be2_ref[...]).astype(o_ref.dtype)


def _vmem_limit_bytes():
    cap = None
    try:
        cap = getattr(pltpu.get_tpu_info(), "vmem_capacity_bytes", None)
    except Exception:
        cap = None
    if not cap:
        cap = 64 * 1024 * 1024
    # Leave ~16 MiB headroom for Mosaic internal scratch / pipeline buffers;
    # never request more than ~100 MiB (v5e/v6e) nor less than 32 MiB.
    return int(min(max(cap - 16 * 1024 * 1024, 32 * 1024 * 1024), 100 * 1024 * 1024))


def _pick_q_tile(L, D, d_ff, vmem_limit, x_buffers):
    """Largest query tile whose per-step live set fits the VMEM budget."""
    weights = 2 * (4 * D * D + 2 * D * d_ff)                   # bf16, single-buffered
    resident = x_buffers * L * D * 4 + 2 * L * D * 2 + weights  # x + KV scratch + weights
    budget = max(vmem_limit - resident, vmem_limit // 4)
    for t in (512, 256, 128, 64, 32, 16, 8):
        if L % t:
            continue
        live = (2 * t * L * 4        # scores + probs (f32)
                + t * d_ff * 4       # FFN intermediate (f32)
                + 8 * t * D * 4      # q / attn / residual / LN temporaries (f32)
                + t * D * 2          # bf16 head-output scratch
                + 2 * t * D * 4)     # double-buffered output tile
        if live <= budget:
            return t
    for t in (512, 256, 128, 64, 32, 16, 8):
        if L % t == 0:
            return t
    return L


def _make_spec(shape, index_map, single_buffer):
    if single_buffer:
        try:
            return pl.BlockSpec(shape, index_map, pipeline_mode=pl.Buffered(1))
        except TypeError:
            pass  # older API without pipeline_mode: fall back to default buffering
    return pl.BlockSpec(shape, index_map)


def prepare_encoder_params(params):
    """Cast matmul weights to bf16 once (hoisted out of the per-call path)."""
    wqkv, bqkv, wo, bo, w1, b1, w2, b2, g1, be1, g2, be2 = params
    bf = lambda w: w.astype(jnp.bfloat16)
    return (bf(wqkv), bqkv, bf(wo), bo, bf(w1), b1, bf(w2), b2, g1, be1, g2, be2)


def encoder_block(x, params, n_head, q_tile=None):
    B, L, D = x.shape
    assert D % n_head == 0
    dk = D // n_head
    if params[0].dtype != jnp.bfloat16:        # allow un-prepared f32 params
        params = prepare_encoder_params(params)
    (wqkv, bqkv, wo, bo, w1, b1, w2, b2, g1, be1, g2, be2) = params
    d_ff = w1.shape[1]

    vmem_limit = _vmem_limit_bytes()
    # Single-buffer the full-sequence x when its double-buffer would eat a big
    # chunk of VMEM (its block index only changes on the outer batch axis).
    single_buffer_x = 2 * L * D * 4 > vmem_limit // 4

    tq = q_tile if q_tile is not None else _pick_q_tile(
        L, D, d_ff, vmem_limit, 1 if single_buffer_x else 2)
    assert L % tq == 0
    tkv = tq if tq % 16 == 0 else L            # KV-projection row-chunk size

    kernel_params = (wqkv, bqkv, wo, bo, w1, b1, w2, b2, g1, be1, g2, be2)

    # Grid-invariant inputs (weights / biases / LN params): single-buffered.
    def full_spec(a):
        zeros = (0,) * a.ndim
        return _make_spec(a.shape, lambda b, qt, _z=zeros: _z, True)

    x_spec = _make_spec((None, L, D), lambda b, qt: (b, 0, 0), single_buffer_x)

    kernel = functools.partial(_encoder_block_kernel, n_head, tq, tkv)

    return pl.pallas_call(
        kernel,
        out_shape=jax.ShapeDtypeStruct((B, L, D), x.dtype),
        grid_spec=pltpu.PrefetchScalarGridSpec(
            num_scalar_prefetch=0,
            grid=(B, L // tq),
            in_specs=[x_spec] + [full_spec(p) for p in kernel_params],
            out_specs=pl.BlockSpec((None, tq, D), lambda b, qt: (b, qt, 0)),
            scratch_shapes=[
                pltpu.VMEM((2, n_head, L, dk), jnp.bfloat16),   # head-major K/V cache
                pltpu.VMEM((tq, D), jnp.bfloat16),              # per-head attn outputs
            ],
        ),
        compiler_params=pltpu.CompilerParams(
            dimension_semantics=("parallel", "arbitrary"),
            vmem_limit_bytes=vmem_limit),
    )(x, *kernel_params)


def encoder_block_ref(x, params, n_head):
    """Pure-JAX f32 reference matching the PyTorch forward semantics."""
    wqkv, bqkv, wo, bo, w1, b1, w2, b2, g1, be1, g2, be2 = params
    B, L, D = x.shape
    dk = D // n_head

    qkv = x @ wqkv + bqkv
    q, k, v = jnp.split(qkv, 3, axis=-1)
    q = q.reshape(B, L, n_head, dk).transpose(0, 2, 1, 3)
    k = k.reshape(B, L, n_head, dk).transpose(0, 2, 1, 3)
    v = v.reshape(B, L, n_head, dk).transpose(0, 2, 1, 3)
    scores = jnp.einsum('bhqd,bhkd->bhqk', q, k) / math.sqrt(dk)
    attn = jax.nn.softmax(scores, axis=-1)
    out = jnp.einsum('bhqk,bhkd->bhqd', attn, v).transpose(0, 2, 1, 3).reshape(B, L, D)
    out = out @ wo + bo

    def ln(h, g, b):
        mu = jnp.mean(h, axis=-1, keepdims=True)
        var = jnp.mean((h - mu) ** 2, axis=-1, keepdims=True)
        return (h - mu) / jnp.sqrt(var + EPS) * g + b

    y1 = ln(x + out, g1, be1)
    f = jnp.maximum(y1 @ w1 + b1, 0.0) @ w2 + b2
    return ln(y1 + f, g2, be2)


def make_params(key, d_model, d_ff):
    ks = jax.random.split(key, 8)
    s = 0.1
    wqkv = s * jax.random.normal(ks[0], (d_model, 3 * d_model), jnp.float32)
    bqkv = s * jax.random.normal(ks[1], (1, 3 * d_model), jnp.float32)
    wo = s * jax.random.normal(ks[2], (d_model, d_model), jnp.float32)
    bo = s * jax.random.normal(ks[3], (1, d_model), jnp.float32)
    w1 = s * jax.random.normal(ks[4], (d_model, d_ff), jnp.float32)
    b1 = s * jax.random.normal(ks[5], (1, d_ff), jnp.float32)
    w2 = s * jax.random.normal(ks[6], (d_ff, d_model), jnp.float32)
    b2 = s * jax.random.normal(ks[7], (1, d_model), jnp.float32)
    # LayerNorm params (PyTorch defaults: ones / zeros)
    g1 = jnp.ones((1, d_model), jnp.float32)
    be1 = jnp.zeros((1, d_model), jnp.float32)
    g2 = jnp.ones((1, d_model), jnp.float32)
    be2 = jnp.zeros((1, d_model), jnp.float32)
    return (wqkv, bqkv, wo, bo, w1, b1, w2, b2, g1, be1, g2, be2)


if __name__ == "__main__":
    B, L, d_model, n_head, d_ff = 2, 8, 32, 4, 64

    key = jax.random.PRNGKey(0)
    kx, kp = jax.random.split(key)
    x = jax.random.normal(kx, (B, L, d_model), jnp.float32)
    params = make_params(kp, d_model, d_ff)
    prepared = prepare_encoder_params(params)   # bf16 weight cast hoisted out of the call

    out = encoder_block(x, prepared, n_head)
    out = jax.block_until_ready(out)

    ref = encoder_block_ref(x, params, n_head)
    # bf16 matmul operands + approx softmax reciprocal vs the f32 reference.
    np.testing.assert_allclose(np.asarray(out), np.asarray(ref), atol=5e-2, rtol=5e-2)

    print("KERNEL_OK")
</pallas_src>

<mosaic_0001>
module attributes {stable_mosaic.version = 11 : i64} {
  func.func @_encoder_block_kernel(%arg0: i32, %arg1: i32, %arg2: memref<1x8x32xf32, #tpu.memory_space<vmem>>, %arg3: memref<32x96xbf16, #tpu.memory_space<vmem>>, %arg4: memref<1x96xf32, #tpu.memory_space<vmem>>, %arg5: memref<32x32xbf16, #tpu.memory_space<vmem>>, %arg6: memref<1x32xf32, #tpu.memory_space<vmem>>, %arg7: memref<32x64xbf16, #tpu.memory_space<vmem>>, %arg8: memref<1x64xf32, #tpu.memory_space<vmem>>, %arg9: memref<64x32xbf16, #tpu.memory_space<vmem>>, %arg10: memref<1x32xf32, #tpu.memory_space<vmem>>, %arg11: memref<1x32xf32, #tpu.memory_space<vmem>>, %arg12: memref<1x32xf32, #tpu.memory_space<vmem>>, %arg13: memref<1x32xf32, #tpu.memory_space<vmem>>, %arg14: memref<1x32xf32, #tpu.memory_space<vmem>>, %arg15: memref<1x8x32xf32, #tpu.memory_space<vmem>>, %arg16: memref<2x4x8x8xbf16, #tpu.memory_space<vmem>>, %arg17: memref<8x32xbf16, #tpu.memory_space<vmem>>) attributes {dimension_semantics = [#tpu.dimension_semantics<parallel>, #tpu.dimension_semantics<arbitrary>], iteration_bounds = array<i64: 2, 1>, scalar_prefetch = 0 : i64, scratch_operands = 2 : i64, tpu.core_type = #tpu.core_type<tc>, window_params = [{transform_indices = @transform_0, window_bounds = array<i64: 1, 8, 32>}, {pipeline_mode = #tpu.pipeline_mode<synchronous>, transform_indices = @transform_1, window_bounds = array<i64: 32, 96>}, {pipeline_mode = #tpu.pipeline_mode<synchronous>, transform_indices = @transform_2, window_bounds = array<i64: 1, 96>}, {pipeline_mode = #tpu.pipeline_mode<synchronous>, transform_indices = @transform_3, window_bounds = array<i64: 32, 32>}, {pipeline_mode = #tpu.pipeline_mode<synchronous>, transform_indices = @transform_4, window_bounds = array<i64: 1, 32>}, {pipeline_mode = #tpu.pipeline_mode<synchronous>, transform_indices = @transform_5, window_bounds = array<i64: 32, 64>}, {pipeline_mode = #tpu.pipeline_mode<synchronous>, transform_indices = @transform_6, window_bounds = array<i64: 1, 64>}, {pipeline_mode = #tpu.pipeline_mode<synchronous>, transform_indices = @transform_7, window_bounds = array<i64: 64, 32>}, {pipeline_mode = #tpu.pipeline_mode<synchronous>, transform_indices = @transform_8, window_bounds = array<i64: 1, 32>}, {pipeline_mode = #tpu.pipeline_mode<synchronous>, transform_indices = @transform_9, window_bounds = array<i64: 1, 32>}, {pipeline_mode = #tpu.pipeline_mode<synchronous>, transform_indices = @transform_10, window_bounds = array<i64: 1, 32>}, {pipeline_mode = #tpu.pipeline_mode<synchronous>, transform_indices = @transform_11, window_bounds = array<i64: 1, 32>}, {pipeline_mode = #tpu.pipeline_mode<synchronous>, transform_indices = @transform_12, window_bounds = array<i64: 1, 32>}, {transform_indices = @transform_13, window_bounds = array<i64: 1, 8, 32>}]} {
    %c0_i32 = arith.constant 0 : i32
    %0 = arith.cmpi eq, %arg1, %c0_i32 : i32
    %1 = arith.extui %0 : i1 to i32
    %c0_i32_0 = arith.constant 0 : i32
    %2 = arith.cmpi ne, %1, %c0_i32_0 : i32
    scf.if %2 {
      %c0_i32_96 = arith.constant 0 : i32
      %c1_i32 = arith.constant 1 : i32
      %173 = arith.muli %c0_i32_96, %c1_i32 : i32
      %c0_i32_97 = arith.constant 0 : i32
      %174 = arith.addi %c0_i32_97, %173 : i32
      %c8_i32_98 = arith.constant 8 : i32
      %175 = arith.muli %174, %c8_i32_98 : i32
      %176 = tpu.assume_multiple %175, 8 : i32
      %c0_99 = arith.constant 0 : index
      %177 = arith.index_cast %176 : i32 to index
      %c0_100 = arith.constant 0 : index
      %178 = vector.load %arg2[%c0_99, %177, %c0_100] : memref<1x8x32xf32, #tpu.memory_space<vmem>>, vector<1x8x32xf32>
      %179 = vector.shape_cast %178 : vector<1x8x32xf32> to vector<8x32xf32>
      %180 = arith.truncf %179 : vector<8x32xf32> to vector<8x32xbf16>
      %c0_101 = arith.constant 0 : index
      %c32 = arith.constant 32 : index
      %181 = vector.load %arg3[%c0_101, %c32] : memref<32x96xbf16, #tpu.memory_space<vmem>>, vector<32x32xbf16>
      %cst_102 = arith.constant dense<0.000000e+00> : vector<8x32xf32>
      %182 = tpu.matmul %180, %181, %cst_102 {dimension_numbers = #tpu.dot_dimension_numbers<[1], [0], [0], [1], [0, 0, 1, 1], [], []>} : vector<8x32xbf16>, vector<32x32xbf16>, vector<8x32xf32> -> vector<8x32xf32>
      %c0_103 = arith.constant 0 : index
      %c32_104 = arith.constant 32 : index
      %183 = vector.load %arg4[%c0_103, %c32_104] : memref<1x96xf32, #tpu.memory_space<vmem>>, vector<1x32xf32>
      %184 = vector.broadcast %183 : vector<1x32xf32> to vector<8x32xf32>
      %185 = arith.addf %182, %184 : vector<8x32xf32>
      %c0_105 = arith.constant 0 : index
      %c64 = arith.constant 64 : index
      %186 = vector.load %arg3[%c0_105, %c64] : memref<32x96xbf16, #tpu.memory_space<vmem>>, vector<32x32xbf16>
      %cst_106 = arith.constant dense<0.000000e+00> : vector<8x32xf32>
      %187 = tpu.matmul %180, %186, %cst_106 {dimension_numbers = #tpu.dot_dimension_numbers<[1], [0], [0], [1], [0, 0, 1, 1], [], []>} : vector<8x32xbf16>, vector<32x32xbf16>, vector<8x32xf32> -> vector<8x32xf32>
      %c0_107 = arith.constant 0 : index
      %c64_108 = arith.constant 64 : index
      %188 = vector.load %arg4[%c0_107, %c64_108] : memref<1x96xf32, #tpu.memory_space<vmem>>, vector<1x32xf32>
      %189 = vector.broadcast %188 : vector<1x32xf32> to vector<8x32xf32>
      %190 = arith.addf %187, %189 : vector<8x32xf32>
      %191 = vector.extract_strided_slice %185 {offsets = [0, 0], sizes = [8, 8], strides = [1, 1]} : vector<8x32xf32> to vector<8x8xf32>
      %192 = arith.truncf %191 : vector<8x8xf32> to vector<8x8xbf16>
      %c0_109 = arith.constant 0 : index
      %c0_110 = arith.constant 0 : index
      %193 = arith.index_cast %176 : i32 to index
      %c0_111 = arith.constant 0 : index
      %194 = vector.load %arg16[%c0_109, %c0_110, %193, %c0_111] : memref<2x4x8x8xbf16, #tpu.memory_space<vmem>>, vector<1x1x8x8xbf16>
      %195 = vector.shape_cast %194 : vector<1x1x8x8xbf16> to vector<8x8xbf16>
      %196 = vector.shape_cast %192 : vector<8x8xbf16> to vector<1x1x8x8xbf16>
      tpu.vector_store %arg16[%c0_109, %c0_110, %193, %c0_111], %196 {strides = array<i32>} : memref<2x4x8x8xbf16, #tpu.memory_space<vmem>>, vector<1x1x8x8xbf16>,
      %197 = vector.extract_strided_slice %190 {offsets = [0, 0], sizes = [8, 8], strides = [1, 1]} : vector<8x32xf32> to vector<8x8xf32>
      %198 = arith.truncf %197 : vector<8x8xf32> to vector<8x8xbf16>
      %c1_112 = arith.constant 1 : index
      %c0_113 = arith.constant 0 : index
      %199 = arith.index_cast %176 : i32 to index
      %c0_114 = arith.constant 0 : index
      %200 = vector.load %arg16[%c1_112, %c0_113, %199, %c0_114] : memref<2x4x8x8xbf16, #tpu.memory_space<vmem>>, vector<1x1x8x8xbf16>
      %201 = vector.shape_cast %200 : vector<1x1x8x8xbf16> to vector<8x8xbf16>
      %202 = vector.shape_cast %198 : vector<8x8xbf16> to vector<1x1x8x8xbf16>
      tpu.vector_store %arg16[%c1_112, %c0_113, %199, %c0_114], %202 {strides = array<i32>} : memref<2x4x8x8xbf16, #tpu.memory_space<vmem>>, vector<1x1x8x8xbf16>,
      %203 = vector.extract_strided_slice %185 {offsets = [0, 8], sizes = [8, 8], strides = [1, 1]} : vector<8x32xf32> to vector<8x8xf32>
      %204 = arith.truncf %203 : vector<8x8xf32> to vector<8x8xbf16>
      %c0_115 = arith.constant 0 : index
      %c1_116 = arith.constant 1 : index
      %205 = arith.index_cast %176 : i32 to index
      %c0_117 = arith.constant 0 : index
      %206 = vector.load %arg16[%c0_115, %c1_116, %205, %c0_117] : memref<2x4x8x8xbf16, #tpu.memory_space<vmem>>, vector<1x1x8x8xbf16>
      %207 = vector.shape_cast %206 : vector<1x1x8x8xbf16> to vector<8x8xbf16>
      %208 = vector.shape_cast %204 : vector<8x8xbf16> to vector<1x1x8x8xbf16>
      tpu.vector_store %arg16[%c0_115, %c1_116, %205, %c0_117], %208 {strides = array<i32>} : memref<2x4x8x8xbf16, #tpu.memory_space<vmem>>, vector<1x1x8x8xbf16>,
      %209 = vector.extract_strided_slice %190 {offsets = [0, 8], sizes = [8, 8], strides = [1, 1]} : vector<8x32xf32> to vector<8x8xf32>
      %210 = arith.truncf %209 : vector<8x8xf32> to vector<8x8xbf16>
      %c1_118 = arith.constant 1 : index
      %c1_119 = arith.constant 1 : index
      %211 = arith.index_cast %176 : i32 to index
      %c0_120 = arith.constant 0 : index
      %212 = vector.load %arg16[%c1_118, %c1_119, %211, %c0_120] : memref<2x4x8x8xbf16, #tpu.memory_space<vmem>>, vector<1x1x8x8xbf16>
      %213 = vector.shape_cast %212 : vector<1x1x8x8xbf16> to vector<8x8xbf16>
      %214 = vector.shape_cast %210 : vector<8x8xbf16> to vector<1x1x8x8xbf16>
      tpu.vector_store %arg16[%c1_118, %c1_119, %211, %c0_120], %214 {strides = array<i32>} : memref<2x4x8x8xbf16, #tpu.memory_space<vmem>>, vector<1x1x8x8xbf16>,
      %215 = vector.extract_strided_slice %185 {offsets = [0, 16], sizes = [8, 8], strides = [1, 1]} : vector<8x32xf32> to vector<8x8xf32>
      %216 = arith.truncf %215 : vector<8x8xf32> to vector<8x8xbf16>
      %c0_121 = arith.constant 0 : index
      %c2_122 = arith.constant 2 : index
      %217 = arith.index_cast %176 : i32 to index
      %c0_123 = arith.constant 0 : index
      %218 = vector.load %arg16[%c0_121, %c2_122, %217, %c0_123] : memref<2x4x8x8xbf16, #tpu.memory_space<vmem>>, vector<1x1x8x8xbf16>
      %219 = vector.shape_cast %218 : vector<1x1x8x8xbf16> to vector<8x8xbf16>
      %220 = vector.shape_cast %216 : vector<8x8xbf16> to vector<1x1x8x8xbf16>
      tpu.vector_store %arg16[%c0_121, %c2_122, %217, %c0_123], %220 {strides = array<i32>} : memref<2x4x8x8xbf16, #tpu.memory_space<vmem>>, vector<1x1x8x8xbf16>,
      %221 = vector.extract_strided_slice %190 {offsets = [0, 16], sizes = [8, 8], strides = [1, 1]} : vector<8x32xf32> to vector<8x8xf32>
      %222 = arith.truncf %221 : vector<8x8xf32> to vector<8x8xbf16>
      %c1_124 = arith.constant 1 : index
      %c2_125 = arith.constant 2 : index
      %223 = arith.index_cast %176 : i32 to index
      %c0_126 = arith.constant 0 : index
      %224 = vector.load %arg16[%c1_124, %c2_125, %223, %c0_126] : memref<2x4x8x8xbf16, #tpu.memory_space<vmem>>, vector<1x1x8x8xbf16>
      %225 = vector.shape_cast %224 : vector<1x1x8x8xbf16> to vector<8x8xbf16>
      %226 = vector.shape_cast %222 : vector<8x8xbf16> to vector<1x1x8x8xbf16>
      tpu.vector_store %arg16[%c1_124, %c2_125, %223, %c0_126], %226 {strides = array<i32>} : memref<2x4x8x8xbf16, #tpu.memory_space<vmem>>, vector<1x1x8x8xbf16>,
      %227 = vector.extract_strided_slice %185 {offsets = [0, 24], sizes = [8, 8], strides = [1, 1]} : vector<8x32xf32> to vector<8x8xf32>
      %228 = arith.truncf %227 : vector<8x8xf32> to vector<8x8xbf16>
      %c0_127 = arith.constant 0 : index
      %c3_128 = arith.constant 3 : index
      %229 = arith.index_cast %176 : i32 to index
      %c0_129 = arith.constant 0 : index
      %230 = vector.load %arg16[%c0_127, %c3_128, %229, %c0_129] : memref<2x4x8x8xbf16, #tpu.memory_space<vmem>>, vector<1x1x8x8xbf16>
      %231 = vector.shape_cast %230 : vector<1x1x8x8xbf16> to vector<8x8xbf16>
      %232 = vector.shape_cast %228 : vector<8x8xbf16> to vector<1x1x8x8xbf16>
      tpu.vector_store %arg16[%c0_127, %c3_128, %229, %c0_129], %232 {strides = array<i32>} : memref<2x4x8x8xbf16, #tpu.memory_space<vmem>>, vector<1x1x8x8xbf16>,
      %233 = vector.extract_strided_slice %190 {offsets = [0, 24], sizes = [8, 8], strides = [1, 1]} : vector<8x32xf32> to vector<8x8xf32>
      %234 = arith.truncf %233 : vector<8x8xf32> to vector<8x8xbf16>
      %c1_130 = arith.constant 1 : index
      %c3_131 = arith.constant 3 : index
      %235 = arith.index_cast %176 : i32 to index
      %c0_132 = arith.constant 0 : index
      %236 = vector.load %arg16[%c1_130, %c3_131, %235, %c0_132] : memref<2x4x8x8xbf16, #tpu.memory_space<vmem>>, vector<1x1x8x8xbf16>
      %237 = vector.shape_cast %236 : vector<1x1x8x8xbf16> to vector<8x8xbf16>
      %238 = vector.shape_cast %234 : vector<8x8xbf16> to vector<1x1x8x8xbf16>
      tpu.vector_store %arg16[%c1_130, %c3_131, %235, %c0_132], %238 {strides = array<i32>} : memref<2x4x8x8xbf16, #tpu.memory_space<vmem>>, vector<1x1x8x8xbf16>,
      %c1_i32_133 = arith.constant 1 : i32
    } else {
    }
    %c8_i32 = arith.constant 8 : i32
    %3 = arith.muli %arg1, %c8_i32 : i32
    %4 = tpu.assume_multiple %3, 8 : i32
    %c0 = arith.constant 0 : index
    %5 = arith.index_cast %4 : i32 to index
    %c0_1 = arith.constant 0 : index
    %6 = vector.load %arg2[%c0, %5, %c0_1] : memref<1x8x32xf32, #tpu.memory_space<vmem>>, vector<1x8x32xf32>
    %7 = vector.shape_cast %6 : vector<1x8x32xf32> to vector<8x32xf32>
    %8 = arith.truncf %7 : vector<8x32xf32> to vector<8x32xbf16>
    %c0_2 = arith.constant 0 : index
    %c0_3 = arith.constant 0 : index
    %9 = vector.load %arg3[%c0_2, %c0_3] : memref<32x96xbf16, #tpu.memory_space<vmem>>, vector<32x32xbf16>
    %cst = arith.constant dense<0.000000e+00> : vector<8x32xf32>
    %10 = tpu.matmul %8, %9, %cst {dimension_numbers = #tpu.dot_dimension_numbers<[1], [0], [0], [1], [0, 0, 1, 1], [], []>} : vector<8x32xbf16>, vector<32x32xbf16>, vector<8x32xf32> -> vector<8x32xf32>
    %c0_4 = arith.constant 0 : index
    %c0_5 = arith.constant 0 : index
    %11 = vector.load %arg4[%c0_4, %c0_5] : memref<1x96xf32, #tpu.memory_space<vmem>>, vector<1x32xf32>
    %12 = vector.broadcast %11 : vector<1x32xf32> to vector<8x32xf32>
    %13 = arith.addf %10, %12 : vector<8x32xf32>
    %cst_6 = arith.constant 0.353553385 : f32
    %14 = vector.broadcast %cst_6 : f32 to vector<8x32xf32>
    %15 = arith.mulf %13, %14 : vector<8x32xf32>
    %16 = vector.extract_strided_slice %15 {offsets = [0, 0], sizes = [8, 8], strides = [1, 1]} : vector<8x32xf32> to vector<8x8xf32>
    %17 = arith.truncf %16 : vector<8x8xf32> to vector<8x8xbf16>
    %c0_7 = arith.constant 0 : index
    %c0_8 = arith.constant 0 : index
    %c0_9 = arith.constant 0 : index
    %c0_10 = arith.constant 0 : index
    %18 = vector.load %arg16[%c0_7, %c0_8, %c0_9, %c0_10] : memref<2x4x8x8xbf16, #tpu.memory_space<vmem>>, vector<1x1x8x8xbf16>
    %19 = vector.shape_cast %18 : vector<1x1x8x8xbf16> to vector<8x8xbf16>
    %c1 = arith.constant 1 : index
    %c0_11 = arith.constant 0 : index
    %c0_12 = arith.constant 0 : index
    %c0_13 = arith.constant 0 : index
    %20 = vector.load %arg16[%c1, %c0_11, %c0_12, %c0_13] : memref<2x4x8x8xbf16, #tpu.memory_space<vmem>>, vector<1x1x8x8xbf16>
    %21 = vector.shape_cast %20 : vector<1x1x8x8xbf16> to vector<8x8xbf16>
    %cst_14 = arith.constant dense<0.000000e+00> : vector<8x8xf32>
    %22 = tpu.matmul %17, %19, %cst_14 {dimension_numbers = #tpu.dot_dimension_numbers<[1], [1], [0], [0], [0, 0, 1, 0], [], []>} : vector<8x8xbf16>, vector<8x8xbf16>, vector<8x8xf32> -> vector<8x8xf32>
    %cst_15 = arith.constant dense<0xFF800000> : vector<8xf32>
    %23 = vector.multi_reduction <maximumf>, %22, %cst_15 [1] : vector<8x8xf32> to vector<8xf32>
    %24 = vector.shape_cast %23 : vector<8xf32> to vector<8x1xf32>
    %25 = vector.broadcast %24 : vector<8x1xf32> to vector<8x8xf32>
    %26 = arith.subf %22, %25 : vector<8x8xf32>
    %27 = math.exp %26 : vector<8x8xf32>
    %cst_16 = arith.constant dense<0.000000e+00> : vector<8xf32>
    %28 = vector.multi_reduction <add>, %27, %cst_16 [1] : vector<8x8xf32> to vector<8xf32>
    %29 = vector.shape_cast %28 : vector<8xf32> to vector<8x1xf32>
    %30 = tpu.reciprocal %29 {approx = true} : vector<8x1xf32> -> vector<8x1xf32>
    %31 = vector.broadcast %30 : vector<8x1xf32> to vector<8x8xf32>
    %32 = arith.mulf %27, %31 : vector<8x8xf32>
    %33 = arith.truncf %32 : vector<8x8xf32> to vector<8x8xbf16>
    %cst_17 = arith.constant dense<0.000000e+00> : vector<8x8xf32>
    %34 = tpu.matmul %33, %21, %cst_17 {dimension_numbers = #tpu.dot_dimension_numbers<[1], [0], [0], [1], [0, 0, 1, 1], [], []>} : vector<8x8xbf16>, vector<8x8xbf16>, vector<8x8xf32> -> vector<8x8xf32>
    %35 = arith.truncf %34 : vector<8x8xf32> to vector<8x8xbf16>
    %c0_18 = arith.constant 0 : index
    %c0_19 = arith.constant 0 : index
    %36 = vector.load %arg17[%c0_18, %c0_19] : memref<8x32xbf16, #tpu.memory_space<vmem>>, vector<8x8xbf16>
    tpu.vector_store %arg17[%c0_18, %c0_19], %35 {strides = array<i32>} : memref<8x32xbf16, #tpu.memory_space<vmem>>, vector<8x8xbf16>,
    %37 = vector.extract_strided_slice %15 {offsets = [0, 8], sizes = [8, 8], strides = [1, 1]} : vector<8x32xf32> to vector<8x8xf32>
    %38 = arith.truncf %37 : vector<8x8xf32> to vector<8x8xbf16>
    %c0_20 = arith.constant 0 : index
    %c1_21 = arith.constant 1 : index
    %c0_22 = arith.constant 0 : index
    %c0_23 = arith.constant 0 : index
    %39 = vector.load %arg16[%c0_20, %c1_21, %c0_22, %c0_23] : memref<2x4x8x8xbf16, #tpu.memory_space<vmem>>, vector<1x1x8x8xbf16>
    %40 = vector.shape_cast %39 : vector<1x1x8x8xbf16> to vector<8x8xbf16>
    %c1_24 = arith.constant 1 : index
    %c1_25 = arith.constant 1 : index
    %c0_26 = arith.constant 0 : index
    %c0_27 = arith.constant 0 : index
    %41 = vector.load %arg16[%c1_24, %c1_25, %c0_26, %c0_27] : memref<2x4x8x8xbf16, #tpu.memory_space<vmem>>, vector<1x1x8x8xbf16>
    %42 = vector.shape_cast %41 : vector<1x1x8x8xbf16> to vector<8x8xbf16>
    %cst_28 = arith.constant dense<0.000000e+00> : vector<8x8xf32>
    %43 = tpu.matmul %38, %40, %cst_28 {dimension_numbers = #tpu.dot_dimension_numbers<[1], [1], [0], [0], [0, 0, 1, 0], [], []>} : vector<8x8xbf16>, vector<8x8xbf16>, vector<8x8xf32> -> vector<8x8xf32>
    %cst_29 = arith.constant dense<0xFF800000> : vector<8xf32>
    %44 = vector.multi_reduction <maximumf>, %43, %cst_29 [1] : vector<8x8xf32> to vector<8xf32>
    %45 = vector.shape_cast %44 : vector<8xf32> to vector<8x1xf32>
    %46 = vector.broadcast %45 : vector<8x1xf32> to vector<8x8xf32>
    %47 = arith.subf %43, %46 : vector<8x8xf32>
    %48 = math.exp %47 : vector<8x8xf32>
    %cst_30 = arith.constant dense<0.000000e+00> : vector<8xf32>
    %49 = vector.multi_reduction <add>, %48, %cst_30 [1] : vector<8x8xf32> to vector<8xf32>
    %50 = vector.shape_cast %49 : vector<8xf32> to vector<8x1xf32>
    %51 = tpu.reciprocal %50 {approx = true} : vector<8x1xf32> -> vector<8x1xf32>
    %52 = vector.broadcast %51 : vector<8x1xf32> to vector<8x8xf32>
    %53 = arith.mulf %48, %52 : vector<8x8xf32>
    %54 = arith.truncf %53 : vector<8x8xf32> to vector<8x8xbf16>
    %cst_31 = arith.constant dense<0.000000e+00> : vector<8x8xf32>
    %55 = tpu.matmul %54, %42, %cst_31 {dimension_numbers = #tpu.dot_dimension_numbers<[1], [0], [0], [1], [0, 0, 1, 1], [], []>} : vector<8x8xbf16>, vector<8x8xbf16>, vector<8x8xf32> -> vector<8x8xf32>
    %56 = arith.truncf %55 : vector<8x8xf32> to vector<8x8xbf16>
    %c0_32 = arith.constant 0 : index
    %c8 = arith.constant 8 : index
    %57 = vector.load %arg17[%c0_32, %c8] : memref<8x32xbf16, #tpu.memory_space<vmem>>, vector<8x8xbf16>
    tpu.vector_store %arg17[%c0_32, %c8], %56 {strides = array<i32>} : memref<8x32xbf16, #tpu.memory_space<vmem>>, vector<8x8xbf16>,
    %58 = vector.extract_strided_slice %15 {offsets = [0, 16], sizes = [8, 8], strides = [1, 1]} : vector<8x32xf32> to vector<8x8xf32>
    %59 = arith.truncf %58 : vector<8x8xf32> to vector<8x8xbf16>
    %c0_33 = arith.constant 0 : index
    %c2 = arith.constant 2 : index
    %c0_34 = arith.constant 0 : index
    %c0_35 = arith.constant 0 : index
    %60 = vector.load %arg16[%c0_33, %c2, %c0_34, %c0_35] : memref<2x4x8x8xbf16, #tpu.memory_space<vmem>>, vector<1x1x8x8xbf16>
    %61 = vector.shape_cast %60 : vector<1x1x8x8xbf16> to vector<8x8xbf16>
    %c1_36 = arith.constant 1 : index
    %c2_37 = arith.constant 2 : index
    %c0_38 = arith.constant 0 : index
    %c0_39 = arith.constant 0 : index
    %62 = vector.load %arg16[%c1_36, %c2_37, %c0_38, %c0_39] : memref<2x4x8x8xbf16, #tpu.memory_space<vmem>>, vector<1x1x8x8xbf16>
    %63 = vector.shape_cast %62 : vector<1x1x8x8xbf16> to vector<8x8xbf16>
    %cst_40 = arith.constant dense<0.000000e+00> : vector<8x8xf32>
    %64 = tpu.matmul %59, %61, %cst_40 {dimension_numbers = #tpu.dot_dimension_numbers<[1], [1], [0], [0], [0, 0, 1, 0], [], []>} : vector<8x8xbf16>, vector<8x8xbf16>, vector<8x8xf32> -> vector<8x8xf32>
    %cst_41 = arith.constant dense<0xFF800000> : vector<8xf32>
    %65 = vector.multi_reduction <maximumf>, %64, %cst_41 [1] : vector<8x8xf32> to vector<8xf32>
    %66 = vector.shape_cast %65 : vector<8xf32> to vector<8x1xf32>
    %67 = vector.broadcast %66 : vector<8x1xf32> to vector<8x8xf32>
    %68 = arith.subf %64, %67 : vector<8x8xf32>
    %69 = math.exp %68 : vector<8x8xf32>
    %cst_42 = arith.constant dense<0.000000e+00> : vector<8xf32>
    %70 = vector.multi_reduction <add>, %69, %cst_42 [1] : vector<8x8xf32> to vector<8xf32>
    %71 = vector.shape_cast %70 : vector<8xf32> to vector<8x1xf32>
    %72 = tpu.reciprocal %71 {approx = true} : vector<8x1xf32> -> vector<8x1xf32>
    %73 = vector.broadcast %72 : vector<8x1xf32> to vector<8x8xf32>
    %74 = arith.mulf %69, %73 : vector<8x8xf32>
    %75 = arith.truncf %74 : vector<8x8xf32> to vector<8x8xbf16>
    %cst_43 = arith.constant dense<0.000000e+00> : vector<8x8xf32>
    %76 = tpu.matmul %75, %63, %cst_43 {dimension_numbers = #tpu.dot_dimension_numbers<[1], [0], [0], [1], [0, 0, 1, 1], [], []>} : vector<8x8xbf16>, vector<8x8xbf16>, vector<8x8xf32> -> vector<8x8xf32>
    %77 = arith.truncf %76 : vector<8x8xf32> to vector<8x8xbf16>
    %c0_44 = arith.constant 0 : index
    %c16 = arith.constant 16 : index
    %78 = vector.load %arg17[%c0_44, %c16] : memref<8x32xbf16, #tpu.memory_space<vmem>>, vector<8x8xbf16>
    tpu.vector_store %arg17[%c0_44, %c16], %77 {strides = array<i32>} : memref<8x32xbf16, #tpu.memory_space<vmem>>, vector<8x8xbf16>,
    %79 = vector.extract_strided_slice %15 {offsets = [0, 24], sizes = [8, 8], strides = [1, 1]} : vector<8x32xf32> to vector<8x8xf32>
    %80 = arith.truncf %79 : vector<8x8xf32> to vector<8x8xbf16>
    %c0_45 = arith.constant 0 : index
    %c3 = arith.constant 3 : index
    %c0_46 = arith.constant 0 : index
    %c0_47 = arith.constant 0 : index
    %81 = vector.load %arg16[%c0_45, %c3, %c0_46, %c0_47] : memref<2x4x8x8xbf16, #tpu.memory_space<vmem>>, vector<1x1x8x8xbf16>
    %82 = vector.shape_cast %81 : vector<1x1x8x8xbf16> to vector<8x8xbf16>
    %c1_48 = arith.constant 1 : index
    %c3_49 = arith.constant 3 : index
    %c0_50 = arith.constant 0 : index
    %c0_51 = arith.constant 0 : index
    %83 = vector.load %arg16[%c1_48, %c3_49, %c0_50, %c0_51] : memref<2x4x8x8xbf16, #tpu.memory_space<vmem>>, vector<1x1x8x8xbf16>
    %84 = vector.shape_cast %83 : vector<1x1x8x8xbf16> to vector<8x8xbf16>
    %cst_52 = arith.constant dense<0.000000e+00> : vector<8x8xf32>
    %85 = tpu.matmul %80, %82, %cst_52 {dimension_numbers = #tpu.dot_dimension_numbers<[1], [1], [0], [0], [0, 0, 1, 0], [], []>} : vector<8x8xbf16>, vector<8x8xbf16>, vector<8x8xf32> -> vector<8x8xf32>
    %cst_53 = arith.constant dense<0xFF800000> : vector<8xf32>
    %86 = vector.multi_reduction <maximumf>, %85, %cst_53 [1] : vector<8x8xf32> to vector<8xf32>
    %87 = vector.shape_cast %86 : vector<8xf32> to vector<8x1xf32>
    %88 = vector.broadcast %87 : vector<8x1xf32> to vector<8x8xf32>
    %89 = arith.subf %85, %88 : vector<8x8xf32>
    %90 = math.exp %89 : vector<8x8xf32>
    %cst_54 = arith.constant dense<0.000000e+00> : vector<8xf32>
    %91 = vector.multi_reduction <add>, %90, %cst_54 [1] : vector<8x8xf32> to vector<8xf32>
    %92 = vector.shape_cast %91 : vector<8xf32> to vector<8x1xf32>
    %93 = tpu.reciprocal %92 {approx = true} : vector<8x1xf32> -> vector<8x1xf32>
    %94 = vector.broadcast %93 : vector<8x1xf32> to vector<8x8xf32>
    %95 = arith.mulf %90, %94 : vector<8x8xf32>
    %96 = arith.truncf %95 : vector<8x8xf32> to vector<8x8xbf16>
    %cst_55 = arith.constant dense<0.000000e+00> : vector<8x8xf32>
    %97 = tpu.matmul %96, %84, %cst_55 {dimension_numbers = #tpu.dot_dimension_numbers<[1], [0], [0], [1], [0, 0, 1, 1], [], []>} : vector<8x8xbf16>, vector<8x8xbf16>, vector<8x8xf32> -> vector<8x8xf32>
    %98 = arith.truncf %97 : vector<8x8xf32> to vector<8x8xbf16>
    %c0_56 = arith.constant 0 : index
    %c24 = arith.constant 24 : index
    %99 = vector.load %arg17[%c0_56, %c24] : memref<8x32xbf16, #tpu.memory_space<vmem>>, vector<8x8xbf16>
    tpu.vector_store %arg17[%c0_56, %c24], %98 {strides = array<i32>} : memref<8x32xbf16, #tpu.memory_space<vmem>>, vector<8x8xbf16>,
    %c0_57 = arith.constant 0 : index
    %c0_58 = arith.constant 0 : index
    %100 = vector.load %arg17[%c0_57, %c0_58] : memref<8x32xbf16, #tpu.memory_space<vmem>>, vector<8x32xbf16>
    %c0_59 = arith.constant 0 : index
    %c0_60 = arith.constant 0 : index
    %101 = vector.load %arg5[%c0_59, %c0_60] : memref<32x32xbf16, #tpu.memory_space<vmem>>, vector<32x32xbf16>
    %cst_61 = arith.constant dense<0.000000e+00> : vector<8x32xf32>
    %102 = tpu.matmul %100, %101, %cst_61 {dimension_numbers = #tpu.dot_dimension_numbers<[1], [0], [0], [1], [0, 0, 1, 1], [], []>} : vector<8x32xbf16>, vector<32x32xbf16>, vector<8x32xf32> -> vector<8x32xf32>
    %c0_62 = arith.constant 0 : index
    %c0_63 = arith.constant 0 : index
    %103 = vector.load %arg6[%c0_62, %c0_63] : memref<1x32xf32, #tpu.memory_space<vmem>>, vector<1x32xf32>
    %104 = vector.broadcast %103 : vector<1x32xf32> to vector<8x32xf32>
    %105 = arith.addf %102, %104 : vector<8x32xf32>
    %106 = arith.addf %7, %105 : vector<8x32xf32>
    %c0_64 = arith.constant 0 : index
    %c0_65 = arith.constant 0 : index
    %107 = vector.load %arg11[%c0_64, %c0_65] : memref<1x32xf32, #tpu.memory_space<vmem>>, vector<1x32xf32>
    %c0_66 = arith.constant 0 : index
    %c0_67 = arith.constant 0 : index
    %108 = vector.load %arg12[%c0_66, %c0_67] : memref<1x32xf32, #tpu.memory_space<vmem>>, vector<1x32xf32>
    %cst_68 = arith.constant dense<0.000000e+00> : vector<8xf32>
    %109 = vector.multi_reduction <add>, %106, %cst_68 [1] : vector<8x32xf32> to vector<8xf32>
    %110 = vector.shape_cast %109 : vector<8xf32> to vector<8x1xf32>
    %cst_69 = arith.constant 3.200000e+01 : f32
    %111 = vector.broadcast %cst_69 : f32 to vector<8x1xf32>
    %112 = arith.divf %110, %111 : vector<8x1xf32>
    %113 = vector.broadcast %112 : vector<8x1xf32> to vector<8x32xf32>
    %114 = arith.subf %106, %113 : vector<8x32xf32>
    %115 = arith.mulf %114, %114 : vector<8x32xf32>
    %cst_70 = arith.constant dense<0.000000e+00> : vector<8xf32>
    %116 = vector.multi_reduction <add>, %115, %cst_70 [1] : vector<8x32xf32> to vector<8xf32>
    %117 = vector.shape_cast %116 : vector<8xf32> to vector<8x1xf32>
    %cst_71 = arith.constant 3.200000e+01 : f32
    %118 = vector.broadcast %cst_71 : f32 to vector<8x1xf32>
    %119 = arith.divf %117, %118 : vector<8x1xf32>
    %120 = vector.broadcast %112 : vector<8x1xf32> to vector<8x32xf32>
    %121 = arith.subf %106, %120 : vector<8x32xf32>
    %cst_72 = arith.constant 9.99999974E-6 : f32
    %122 = vector.broadcast %cst_72 : f32 to vector<8x1xf32>
    %123 = arith.addf %119, %122 : vector<8x1xf32>
    %124 = math.rsqrt %123 : vector<8x1xf32>
    %125 = vector.broadcast %124 : vector<8x1xf32> to vector<8x32xf32>
    %126 = arith.mulf %121, %125 : vector<8x32xf32>
    %127 = vector.broadcast %107 : vector<1x32xf32> to vector<8x32xf32>
    %128 = arith.mulf %126, %127 : vector<8x32xf32>
    %129 = vector.broadcast %108 : vector<1x32xf32> to vector<8x32xf32>
    %130 = arith.addf %128, %129 : vector<8x32xf32>
    %131 = arith.truncf %130 : vector<8x32xf32> to vector<8x32xbf16>
    %c0_73 = arith.constant 0 : index
    %c0_74 = arith.constant 0 : index
    %132 = vector.load %arg7[%c0_73, %c0_74] : memref<32x64xbf16, #tpu.memory_space<vmem>>, vector<32x64xbf16>
    %cst_75 = arith.constant dense<0.000000e+00> : vector<8x64xf32>
    %133 = tpu.matmul %131, %132, %cst_75 {dimension_numbers = #tpu.dot_dimension_numbers<[1], [0], [0], [1], [0, 0, 1, 1], [], []>} : vector<8x32xbf16>, vector<32x64xbf16>, vector<8x64xf32> -> vector<8x64xf32>
    %c0_76 = arith.constant 0 : index
    %c0_77 = arith.constant 0 : index
    %134 = vector.load %arg8[%c0_76, %c0_77] : memref<1x64xf32, #tpu.memory_space<vmem>>, vector<1x64xf32>
    %135 = vector.broadcast %134 : vector<1x64xf32> to vector<8x64xf32>
    %136 = arith.addf %133, %135 : vector<8x64xf32>
    %cst_78 = arith.constant 0.000000e+00 : f32
    %137 = vector.broadcast %cst_78 : f32 to vector<8x64xf32>
    %138 = arith.maximumf %136, %137 : vector<8x64xf32>
    %139 = arith.truncf %138 : vector<8x64xf32> to vector<8x64xbf16>
    %c0_79 = arith.constant 0 : index
    %c0_80 = arith.constant 0 : index
    %140 = vector.load %arg9[%c0_79, %c0_80] : memref<64x32xbf16, #tpu.memory_space<vmem>>, vector<64x32xbf16>
    %cst_81 = arith.constant dense<0.000000e+00> : vector<8x32xf32>
    %141 = tpu.matmul %139, %140, %cst_81 {dimension_numbers = #tpu.dot_dimension_numbers<[1], [0], [0], [1], [0, 0, 1, 1], [], []>} : vector<8x64xbf16>, vector<64x32xbf16>, vector<8x32xf32> -> vector<8x32xf32>
    %c0_82 = arith.constant 0 : index
    %c0_83 = arith.constant 0 : index
    %142 = vector.load %arg10[%c0_82, %c0_83] : memref<1x32xf32, #tpu.memory_space<vmem>>, vector<1x32xf32>
    %143 = vector.broadcast %142 : vector<1x32xf32> to vector<8x32xf32>
    %144 = arith.addf %141, %143 : vector<8x32xf32>
    %145 = arith.addf %130, %144 : vector<8x32xf32>
    %c0_84 = arith.constant 0 : index
    %c0_85 = arith.constant 0 : index
    %146 = vector.load %arg13[%c0_84, %c0_85] : memref<1x32xf32, #tpu.memory_space<vmem>>, vector<1x32xf32>
    %c0_86 = arith.constant 0 : index
    %c0_87 = arith.constant 0 : index
    %147 = vector.load %arg14[%c0_86, %c0_87] : memref<1x32xf32, #tpu.memory_space<vmem>>, vector<1x32xf32>
    %cst_88 = arith.constant dense<0.000000e+00> : vector<8xf32>
    %148 = vector.multi_reduction <add>, %145, %cst_88 [1] : vector<8x32xf32> to vector<8xf32>
    %149 = vector.shape_cast %148 : vector<8xf32> to vector<8x1xf32>
    %cst_89 = arith.constant 3.200000e+01 : f32
    %150 = vector.broadcast %cst_89 : f32 to vector<8x1xf32>
    %151 = arith.divf %149, %150 : vector<8x1xf32>
    %152 = vector.broadcast %151 : vector<8x1xf32> to vector<8x32xf32>
    %153 = arith.subf %145, %152 : vector<8x32xf32>
    %154 = arith.mulf %153, %153 : vector<8x32xf32>
    %cst_90 = arith.constant dense<0.000000e+00> : vector<8xf32>
    %155 = vector.multi_reduction <add>, %154, %cst_90 [1] : vector<8x32xf32> to vector<8xf32>
    %156 = vector.shape_cast %155 : vector<8xf32> to vector<8x1xf32>
    %cst_91 = arith.constant 3.200000e+01 : f32
    %157 = vector.broadcast %cst_91 : f32 to vector<8x1xf32>
    %158 = arith.divf %156, %157 : vector<8x1xf32>
    %159 = vector.broadcast %151 : vector<8x1xf32> to vector<8x32xf32>
    %160 = arith.subf %145, %159 : vector<8x32xf32>
    %cst_92 = arith.constant 9.99999974E-6 : f32
    %161 = vector.broadcast %cst_92 : f32 to vector<8x1xf32>
    %162 = arith.addf %158, %161 : vector<8x1xf32>
    %163 = math.rsqrt %162 : vector<8x1xf32>
    %164 = vector.broadcast %163 : vector<8x1xf32> to vector<8x32xf32>
    %165 = arith.mulf %160, %164 : vector<8x32xf32>
    %166 = vector.broadcast %146 : vector<1x32xf32> to vector<8x32xf32>
    %167 = arith.mulf %165, %166 : vector<8x32xf32>
    %168 = vector.broadcast %147 : vector<1x32xf32> to vector<8x32xf32>
    %169 = arith.addf %167, %168 : vector<8x32xf32>
    %c0_93 = arith.constant 0 : index
    %c0_94 = arith.constant 0 : index
    %c0_95 = arith.constant 0 : index
    %170 = vector.load %arg15[%c0_93, %c0_94, %c0_95] : memref<1x8x32xf32, #tpu.memory_space<vmem>>, vector<1x8x32xf32>
    %171 = vector.shape_cast %170 : vector<1x8x32xf32> to vector<8x32xf32>
    %172 = vector.shape_cast %169 : vector<8x32xf32> to vector<1x8x32xf32>
    tpu.vector_store %arg15[%c0_93, %c0_94, %c0_95], %172 {strides = array<i32>} : memref<1x8x32xf32, #tpu.memory_space<vmem>>, vector<1x8x32xf32>,
    return
  }
  func.func @transform_0(%arg0: i32, %arg1: i32) -> (i32, i32, i32) {
    %c0_i32 = arith.constant 0 : i32
    %c0_i32_0 = arith.constant 0 : i32
    %c0_i32_1 = arith.constant 0 : i32
    return %arg0, %c0_i32, %c0_i32_0 : i32, i32, i32
  }
  func.func @transform_1(%arg0: i32, %arg1: i32) -> (i32, i32) {
    %c0_i32 = arith.constant 0 : i32
    %c0_i32_0 = arith.constant 0 : i32
    %c0_i32_1 = arith.constant 0 : i32
    return %c0_i32, %c0_i32_0 : i32, i32
  }
  func.func @transform_2(%arg0: i32, %arg1: i32) -> (i32, i32) {
    %c0_i32 = arith.constant 0 : i32
    %c0_i32_0 = arith.constant 0 : i32
    %c0_i32_1 = arith.constant 0 : i32
    return %c0_i32, %c0_i32_0 : i32, i32
  }
  func.func @transform_3(%arg0: i32, %arg1: i32) -> (i32, i32) {
    %c0_i32 = arith.constant 0 : i32
    %c0_i32_0 = arith.constant 0 : i32
    %c0_i32_1 = arith.constant 0 : i32
    return %c0_i32, %c0_i32_0 : i32, i32
  }
  func.func @transform_4(%arg0: i32, %arg1: i32) -> (i32, i32) {
    %c0_i32 = arith.constant 0 : i32
    %c0_i32_0 = arith.constant 0 : i32
    %c0_i32_1 = arith.constant 0 : i32
    return %c0_i32, %c0_i32_0 : i32, i32
  }
  func.func @transform_5(%arg0: i32, %arg1: i32) -> (i32, i32) {
    %c0_i32 = arith.constant 0 : i32
    %c0_i32_0 = arith.constant 0 : i32
    %c0_i32_1 = arith.constant 0 : i32
    return %c0_i32, %c0_i32_0 : i32, i32
  }
  func.func @transform_6(%arg0: i32, %arg1: i32) -> (i32, i32) {
    %c0_i32 = arith.constant 0 : i32
    %c0_i32_0 = arith.constant 0 : i32
    %c0_i32_1 = arith.constant 0 : i32
    return %c0_i32, %c0_i32_0 : i32, i32
  }
  func.func @transform_7(%arg0: i32, %arg1: i32) -> (i32, i32) {
    %c0_i32 = arith.constant 0 : i32
    %c0_i32_0 = arith.constant 0 : i32
    %c0_i32_1 = arith.constant 0 : i32
    return %c0_i32, %c0_i32_0 : i32, i32
  }
  func.func @transform_8(%arg0: i32, %arg1: i32) -> (i32, i32) {
    %c0_i32 = arith.constant 0 : i32
    %c0_i32_0 = arith.constant 0 : i32
    %c0_i32_1 = arith.constant 0 : i32
    return %c0_i32, %c0_i32_0 : i32, i32
  }
  func.func @transform_9(%arg0: i32, %arg1: i32) -> (i32, i32) {
    %c0_i32 = arith.constant 0 : i32
    %c0_i32_0 = arith.constant 0 : i32
    %c0_i32_1 = arith.constant 0 : i32
    return %c0_i32, %c0_i32_0 : i32, i32
  }
  func.func @transform_10(%arg0: i32, %arg1: i32) -> (i32, i32) {
    %c0_i32 = arith.constant 0 : i32
    %c0_i32_0 = arith.constant 0 : i32
    %c0_i32_1 = arith.constant 0 : i32
    return %c0_i32, %c0_i32_0 : i32, i32
  }
  func.func @transform_11(%arg0: i32, %arg1: i32) -> (i32, i32) {
    %c0_i32 = arith.constant 0 : i32
    %c0_i32_0 = arith.constant 0 : i32
    %c0_i32_1 = arith.constant 0 : i32
    return %c0_i32, %c0_i32_0 : i32, i32
  }
  func.func @transform_12(%arg0: i32, %arg1: i32) -> (i32, i32) {
    %c0_i32 = arith.constant 0 : i32
    %c0_i32_0 = arith.constant 0 : i32
    %c0_i32_1 = arith.constant 0 : i32
    return %c0_i32, %c0_i32_0 : i32, i32
  }
  func.func @transform_13(%arg0: i32, %arg1: i32) -> (i32, i32, i32) {
    %c0_i32 = arith.constant 0 : i32
    %c0_i32_0 = arith.constant 0 : i32
    return %arg0, %arg1, %c0_i32 : i32, i32, i32
  }
}

</mosaic_0001>

<bundles_post_ra>
// kernel: tpu_custom_call.1
= control target key start
LH: loop header
LB: loop body
LE: loop exit
PB: predicated region body
PF: predicated region fallthrough
CT: control target
= control target key end

     0   :  { %s1799_s0 = inlined_call_operand.vmem [shape: f32[2,8,32], index: 0, kind: input, shape index: {}]   ;;  %s1800_s1 = inlined_call_operand.vmem [shape: bf16[32,96], index: 1, kind: input, shape index: {}]   ;;  %s1801_s2 = inlined_call_operand.vmem [shape: f32[1,96], index: 2, kind: input, shape index: {}]   ;;  %s1802_s3 = inlined_call_operand.vmem [shape: bf16[32,32], index: 3, kind: input, shape index: {}]   ;;  %s1803_s4 = inlined_call_operand.vmem [shape: f32[1,32], index: 4, kind: input, shape index: {}]   ;;  %s1804_s5 = inlined_call_operand.hbm [shape: bf16[32,64], index: 5, kind: input, shape index: {}]   ;;  %s1805_s6 = inlined_call_operand.vmem [shape: f32[1,64], index: 6, kind: input, shape index: {}]   ;;  %s1806_s7 = inlined_call_operand.vmem [shape: bf16[64,32], index: 7, kind: input, shape index: {}]   ;;  %s1807_s8 = inlined_call_operand.vmem [shape: f32[1,32], index: 8, kind: input, shape index: {}]   ;;  %s1808_s9 = inlined_call_operand.vmem [shape: f32[1,32], index: 9, kind: input, shape index: {}]   ;;  %s1809_s10 = inlined_call_operand.vmem [shape: f32[1,32], index: 10, kind: input, shape index: {}]   ;;  %s1810_s11 = inlined_call_operand.vmem [shape: f32[1,32], index: 11, kind: input, shape index: {}]   ;;  %s1811_s12 = inlined_call_operand.vmem [shape: f32[1,32], index: 12, kind: input, shape index: {}]   ;;  %s1812_s13 = inlined_call_operand.hbm [shape: f32[2,8,32], index: 13, kind: output, shape index: {}]  }
   0x1   :  { %1816 = sst [smem:[#allocation13_spill]] %s1799_s0 }
   0x2   :  { %1817 = sst [smem:[#allocation14_spill]] %s1804_s5 }
   0x3   :  { %18 = vsyncpa [#allocation5], 0 }
   0x4   :  { %19 = vsyncpa [#allocation6], 0 }
   0x5   :  { %21 = vsyncpa [#allocation6 + $0x1], 0  ;;  %s1582_s25 = smov 0   ;;  %s1584_s26 = smov 0  }
   0x6   :  { %s1586_s27 = smov 0   ;;  %s1588_s28 = smov 0  }
   0x7   :  { %s1590_s29 = smov 0   ;;  %s1592_s30 = smov 0  }
   0x8 LB: > { %1818 = sst [smem:[#allocation10_spill]] %s1478_s25  ;;  %s1191_s14 = sadd.s32 4294967295, %s1498_s30   ;;  %s1498_s30 = sphi %s1592_s30, %s27_s30   ;;  %s1494_s29 = sphi %s1590_s29, %s1827_s29   ;;  %s1490_s28 = sphi %s1588_s28, %s1826_s28   ;;  %s1486_s27 = sphi %s1586_s27, %s1830_s27   ;;  %s1482_s26 = sphi %s1584_s26, %s1829_s26   ;;  %s1478_s25 = sphi %s1582_s25, %s1828_s25  }
   0x9   : > { %1819 = sst [smem:[#allocation11_spill]] %s1494_s29  ;;  %s1192_s15 = sadd.s32 4294967294, %s1498_s30  }
   0xa   : > { %s39_s16 = sadd.s32 1, %s1494_s29  ;;  %s326_s17 = sadd.s32 1, %s1486_s27 }
   0xb   : > { %p41_p0 = scmp.ge.s32.totalorder %s39_s16, 2  ;;  %p336_p1 = scmp.ne.s32.totalorder %s1486_s27, %s1482_s26 }
   0xc   : > { %p337_p2 = scmp.eq.s32.totalorder %s1191_s14, 1  ;;  %p342_p3 = scmp.ne.s32.totalorder %s1482_s26, %s1478_s25 }
   0xd   : > { %s1832_s16 = smov (%p41_p0, %s39_s16), 0  ;;  %p343_p5 = scmp.eq.s32.totalorder %s1192_s15, 1 }
   0xe   : > { %1820 = sst [smem:[#allocation12_spill]] %s1832_s16  ;;  %p1622_p4 = por %p337_p2, %p336_p1 }
   0xf   : > { %s321_s19 = ssub.s32 %s1494_s29, %s1832_s16  ;;  %p1193_p6 = scmp.ge.s32.totalorder %s1498_s30, 1 }
  0x10   : > { %p324_p7 = scmp.eq.s32.totalorder %s321_s19, 0  ;;  %p1629_p8 = por %p343_p5, %p342_p3 }
  0x11   : > { %p350_p9 = scmp.lt.s32.totalorder %s1498_s30, 3  ;;  %p1292_p11 = scmp.eq.s32.totalorder %s1191_s14, 0 }
  0x12   : > { %s1635_s21 = scalar_select %p324_p7, %s1486_s27, %s326_s17  }
  0x13   : > { %p351_p10 = pnand %p1193_p6, %p350_p9  ;;  %s1823_s5 = sld [smem:[#allocation14_spill]] }
  0x14   : > { %s1500_s25 = smov [#allocation4]   ;;  %s1501_s19 = smov 64  }
  0x15   : > { %p1284_p12 = pneg %p351_p10  ;;  %s375_s15 = sshll.u32 %s1500_s25, 4  ;;  %s376_s15 = int_to_ptr.vmem [resolvable:$true] %s375_s15 }
  0x16   : > { %s1502_s16 = smov 4   ;;  %419 = sbr.rel (%p351_p10) target bundleno = 1997 (0x7cd), region = 72 }
  0x17   : > { %p1285_p13 = pnand %p1292_p11, %p1284_p12 }
  0x19   : > { %s373_s24 = sshll.u32 %s1823_s5, 4  ;;  %s374_s24 = int_to_ptr.hbm [resolvable:$true] %s373_s24 }
  0x1a   : > { %1287 = dma.hbm_to_vmem [thread:$0]  (!%p1285_p13), %s374_s24, 256, %s376_s15, [#allocation5], %s1501_s19, %s1501_s19, %s1502_s16  }
  0x1b   : > { %1469 = dma.done.wait (%p1292_p11), [#allocation5], 256  }
  0x1c   : > { %1471 = vsyncadd (%p1292_p11), [#allocation5], 4294967040  ;;  %v1267_v0 = vld [vmem:[%s1800_s1 + $0x8] sm:$0xff]  ;;  %v1266_v1 = vld [vmem:[%s1800_s1] sm:$0xff]  ;;  %s1503_s23 = smov 96   ;;  %s1504_s25 = smov 64  }
  0x1d   : > { %493 = vrot.lane.b32.xlu0 %v1267_v0, %s1503_s23  ;;  %517 = vrot.lane.b32.xlu2 %v1266_v1, %s1504_s25  ;;  %p463_p0 = scmp.lt.s32.totalorder %s1490_s28, 1  ;;  %v1269_v2 = vld [vmem:[%s1800_s1 + $0x8] sm:$0xff]  ;;  %s1824_s0 = sld [smem:[#allocation13_spill]]  ;;  %v1268_v3 = vld [vmem:[%s1800_s1] sm:$0xff]  ;;  %vm500_vm0 = vcmask 261120   ;;  %vm540_vm1 = vcmask 60416  }
  0x1e   : > { %625 = vmatpush.bf16.msra.mxu2 %v1269_v2  ;;  %v1355_v6 = vld [vmem:[%s1801_s2] ss:$0 sm:$0xff]  ;;  %s1506_s19 = smov 112   ;;  %s1507_s29 = smov 120   ;;  %vm637_vm2 = vcmask 64512   ;;  %vm672_vm3 = vcmask 1043456  }
  0x1f   : > { %s464_s16 = scalar_select %p463_p0, %s1490_s28, 1  ;;  %497 = vrot.lane.b32.xlu1 %v1355_v6, %s1503_s23  ;;  %v1356_v14 = vld [vmem:[%s1801_s2] ss:$0 sm:$0xff]  ;;  %vm754_vm4 = vcmask 126016   ;;  %vm817_vm5 = vcmask 191616   ;;  %vm880_vm6 = vcmask 257216  }
  0x20   : > { %s1509_s17 = smov 24   ;;  %s1510_s14 = smov 16   ;;  %vm1034_vm11 = vcmask 523264  }
  0x21   : > { %s1199_s24 = sshll.u32 %s464_s16, 3  ;;  %s460_s22 = sand.u32 1, %s1482_s26  }
  0x22   : > { %626 = vmatpush.bf16.msra.mxu2 %v1268_v3  ;;  %s1198_s16 = sshll.u32 %s460_s22, 3  ;;  %s1263_s15 = sshll.u32 %s1490_s28, 3 }
  0x23   : > { %s466_s5 = scalar_lea.vmem %s1824_s0, %s1199_s24 }
  0x24   : > { %v1658_v4 = vld [vmem:[%s466_s5] sm:$0xff]  ;;  %s1086_s5 = scalar_lea.sflag [#allocation6], %s460_s22 }
  0x25   : > { %491 = vrot.lane.b32.xlu0 %v1266_v1, %s1503_s23  ;;  %v473_v5 = vpack.c.bf16 %v1658_v4, %v1658_v4  ;;  %s1505_s23 = smov 104  }
  0x27   : > { %1218 = vmatmul.msk.bf16.vlgmr.msra.gmra.mxu2 %vm500_vm0, %v473_v5  ;;  %519 = vrot.lane.b32.xlu1 %v1267_v0, %s1504_s25 }
  0x77   : > { %v518_v13 = vpop.permute.xlu2 %517 }
  0x8f   : > { %v494_v7 = vpop.permute.xlu0 %493 }
  0x90   : > { %510 = vmatpush.bf16.msra.mxu0 %v494_v7 }
  0x91   : > { %v498_v10 = vpop.permute.xlu1 %497 }
  0x97   : > { %v492_v8 = vpop.permute.xlu0 %491 }
  0x98   : > { %511 = vmatpush.bf16.msra.mxu0 %v492_v8 }
  0x99   : > { %v520_v12 = vpop.permute.xlu1 %519 }
  0x9a   : > { %532 = vmatpush.bf16.msra.mxu1 %v520_v12 }
  0x9b   : > { %1208 = vmatmul.msk.bf16.vlgmr.msra.gmra.mxu0 %vm500_vm0, %v473_v5 }
  0x9e   : > { %533 = vmatpush.bf16.msra.mxu1 %v518_v13 }
  0xa1   : > { %1209 = vmatmul.msk.bf16.vlgmr.msra.gmra.mxu1 %vm500_vm0, %v473_v5 }
  0xaa   : > { %v628_v9 = vpop.f32.mrf.mxu2 }
  0xab   : > { %v629_v17 = vadd.f32 %v1356_v14, %v628_v9 }
  0xad   : > { %v632_v19 = vmul.f32 0.35355338, %v629_v17 }
  0xaf   : > { %v633_v21 = vpack.c.bf16 %v632_v19, %v632_v19 }
  0xb2   : > { %v630_v11 = vpop.f32.mrf.mxu2 }
 0x118   : > { %v513_v15 = vpop.f32.mrf.mxu0 }
 0x119   : > { %v514_v16 = vadd.f32 %v513_v15, %v498_v10 }
 0x11b   : > { %v539_v18 = vpack.c.bf16 %v514_v16, %v514_v16 }
 0x11d   : > { %541 = vst.msk [vmem:[#allocation2] sm:$0xf] %vm540_vm1, %v539_v18  ;;  %577 = vrot.lane.b32.xlu1 %v539_v18, %s1505_s23  ;;  %563 = vrot.lane.b32.xlu0 %v539_v18, %s1506_s19 }
 0x11e   : > { %548 = vrot.lane.b32.xlu2 %v539_v18, %s1507_s29  ;;  %v535_v33 = vpop.f32.mrf.mxu1 }
 0x120   : > { %v515_v20 = vpop.f32.mrf.mxu0 }
 0x124   : > { %v634_v22 = vld [vmem:[#allocation2] sm:$0xf] }
 0x125   : > { %v642_v23 = vsel %vm637_vm2, %v634_v22, 0  ;;  %823 = vrot.lane.b32.xlu1 %v633_v21, %s1505_s23  ;;  %760 = vrot.lane.b32.xlu0 %v633_v21, %s1506_s19 }
 0x126   : > { %651 = vmatpush.bf16.xpose.msra.mxu3 %v642_v23  ;;  %697 = vrot.lane.b32.xlu2 %v633_v21, %s1507_s29  ;;  %v537_v37 = vpop.f32.mrf.mxu1 }
 0x12d   : > { %1219 = vmatmul.msk.bf16.vlgmr.msra.gmra.mxu3 %vm637_vm2, %v633_v21  ;;  %523 = vrot.lane.b32.xlu1 %v1355_v6, %s1504_s25  ;;  %s1508_s25 = smov 8  }
 0x178   : > { %v549_v24 = vpop.permute.xlu2 %548 }
 0x179   : > { %554 = vst.msk [vmem:[#allocation2 + $0x4] sm:$0xf] %vm540_vm1, %v549_v24 }
 0x180   : > { %v693_v25 = vld [vmem:[#allocation2 + $0x4] sm:$0xf]  ;;  %v698_v27 = vpop.permute.xlu2 %697 }
 0x181   : > { %v703_v26 = vsel %vm637_vm2, %v693_v25, 0 }
 0x182   : > { %712 = vmatpush.bf16.xpose.msrb.mxu1 %v703_v26 }
 0x189   : > { %1221 = vmatmul.msk.bf16.vlgmr.msrb.gmra.mxu1 %vm637_vm2, %v698_v27 }
 0x18f   : > { %v578_v28 = vpop.permute.xlu1 %577  ;;  %v564_v29 = vpop.permute.xlu0 %563 }
 0x190   : > { %583 = vst.msk [vmem:[#allocation2 + $0xc] sm:$0xf] %vm540_vm1, %v578_v28 }
 0x191   : > { %569 = vst.msk [vmem:[#allocation2 + $0x8] sm:$0xf] %vm540_vm1, %v564_v29 }
 0x197   : > { %v820_v30 = vld [vmem:[#allocation2 + $0xc] sm:$0xf]  ;;  %v824_v35 = vpop.permute.xlu1 %823  ;;  %v761_v36 = vpop.permute.xlu0 %760 }
 0x198   : > { %v757_v31 = vld [vmem:[#allocation2 + $0x8] sm:$0xf]  ;;  %v829_v32 = vsel %vm637_vm2, %v820_v30, 0 }
 0x199   : > { %v766_v34 = vsel %vm637_vm2, %v757_v31, 0  ;;  %838 = vmatpush.bf16.xpose.msra.mxu1 %v829_v32 }
 0x19a   : > { %775 = vmatpush.bf16.xpose.msrb.mxu3 %v766_v34 }
 0x19f   : > { %v524_v41 = vpop.permute.xlu1 %523 }
 0x1a0   : > { %1225 = vmatmul.msk.bf16.vlgmr.msra.gmra.mxu1 %vm637_vm2, %v824_v35  ;;  %v536_v42 = vadd.f32 %v535_v33, %v524_v41 }
 0x1a1   : > { %1223 = vmatmul.msk.bf16.vlgmr.msrb.gmra.mxu3 %vm637_vm2, %v761_v36 }
 0x1a2   : > { %v542_v43 = vpack.c.bf16 %v536_v42, %v536_v42 }
 0x1a4   : > { %546 = vst.msk [vmem:[#allocation2 + $0x10] sm:$0xf] %vm540_vm1, %v542_v43 }
 0x1ab   : > { %v636_v44 = vld [vmem:[#allocation2 + $0x10] sm:$0xf] }
 0x1ac   : > { %v674_v45 = vsel %vm672_vm3, %v636_v44, 0 }
 0x1ad   : > { %683 = vmatpush.bf16.msrb.mxu0 %v674_v45 }
 0x1b0   : > { %v653_v38 = vpop.f32.mrf.mxu3 }
 0x1b1   : > { %v657_v39 = vsel %vm637_vm2, %v653_v38, -inf }
 0x1b2   : > { %658 = vmax.xlane.f32.xlu0 %v657_v39 }
 0x1b8   : > { %v655_v40 = vpop.f32.mrf.mxu3 }
 0x206   : > { %v714_v46 = vpop.f32.mrf.mxu1 }
 0x207   : > { %v718_v47 = vsel %vm637_vm2, %v714_v46, -inf }
 0x208   : > { %719 = vmax.xlane.f32.xlu2 %v718_v47 }
 0x20e   : > { %v716_v48 = vpop.f32.mrf.mxu1 }
 0x21d   : > { %v840_v49 = vpop.f32.mrf.mxu1 }
 0x21e   : > { %v844_v50 = vsel %vm637_vm2, %v840_v49, -inf }
 0x21f   : > { %845 = vmax.xlane.f32.xlu1 %v844_v50  ;;  %v1271_v50 = vld [vmem:[%s1802_s3 + $0x8] sm:$0xff] }
 0x220   : > { %912 = vmatpush.bf16.msra.mxu3 %v1271_v50 }
 0x224   : > { %v777_v51 = vpop.f32.mrf.mxu3 }
 0x225   : > { %v781_v52 = vsel %vm637_vm2, %v777_v51, -inf  ;;  %v842_v53 = vpop.f32.mrf.mxu1  ;;  %v659_v55 = vpop.xlane.xlu0 %658 }
 0x226   : > { %782 = vmax.xlane.f32.xlu2 %v781_v52  ;;  %v660_v58 = vsub.f32 %v653_v38, %v659_v55  ;;  %v1357_v55 = vld [vmem:[%s1803_s4] ss:$0 sm:$0xff] }
 0x228   : > { %v661_v60 = vmul.f32 1.442695, %v660_v58 }
 0x22c   : > { %v779_v54 = vpop.f32.mrf.mxu3 }
 0x238   : > { %584 = vrot.lane.b32.xlu1 %v542_v43, %s1505_s23 }
 0x23e   : > { %556 = vrot.lane.b32.xlu2 %v542_v43, %s1507_s29  ;;  %s1097_s29 = scalar_lea.hbm %s1812_s13, %s1263_s15 }
 0x23f   : > { %s1101_s0 = sshll.u32 %s1097_s29, 4  ;;  %s1102_s0 = int_to_ptr.hbm [resolvable:$true] %s1101_s0 }
 0x240   : > { %s1430_s24 = sshra.s32 %s1102_s0, 4  ;;  %s1431_s24 = int_to_ptr.hbm [resolvable:$true] %s1430_s24 }
 0x241   : > { %s1432_s15 = scalar_lea.hbm %s1431_s24, 8  ;;  %p1437_p5 = scmp.lt.s32.totalorder %s1431_s24, %s1812_s13 }
 0x242   : > { %p1433_p1 = scmp.ne.s32.totalorder %s1431_s24, %s1432_s15 }
 0x244   : > { %p1434_p2 = pnand %p1433_p1, %p1622_p4 }
 0x246   : > { %570 = vrot.lane.b32.xlu2 %v542_v43, %s1506_s19  ;;  %p1435_p3 = pneg %p1434_p2 }
 0x27b   : > { %v720_v56 = vpop.xlane.xlu2 %719 }
 0x27c   : > { %v721_v57 = vsub.f32 %v714_v46, %v720_v56 }
 0x27e   : > { %v722_v59 = vmul.f32 1.442695, %v721_v57 }
 0x280   : > { %1364 = vpow2.f32 %v722_v59 }
 0x281   : > { %1366 = vpow2.f32 %v661_v60 }
 0x286   : > { %v1365_v61 = vpop.eup %1364 }
 0x287   : > { %v724_v62 = vsel %vm637_vm2, %v1365_v61, 0.0  ;;  %v1367_v63 = vpop.eup %1366 }
 0x288   : > { %725 = vadd.xlane.f32.xlu0 %v724_v62  ;;  %v663_v0 = vsel %vm637_vm2, %v1367_v63, 0.0 }
 0x290   : > { %664 = vadd.xlane.f32.xlu0 %v663_v0 }
 0x292   : > { %v846_v1 = vpop.xlane.xlu1 %845 }
 0x293   : > { %v847_v2 = vsub.f32 %v840_v49, %v846_v1 }
 0x295   : > { %v848_v3 = vmul.f32 1.442695, %v847_v2 }
 0x297   : > { %1368 = vpow2.f32 %v848_v3 }
 0x299   : > { %v783_v5 = vpop.xlane.xlu2 %782 }
 0x29a   : > { %v784_v6 = vsub.f32 %v777_v51, %v783_v5  ;;  %v1270_v51 = vld [vmem:[%s1802_s3] sm:$0xff] }
 0x29b   : > { %913 = vmatpush.bf16.msra.mxu3 %v1270_v51 }
 0x29c   : > { %v785_v7 = vmul.f32 1.442695, %v784_v6 }
 0x29d   : > { %v1369_v8 = vpop.eup %1368 }
 0x29e   : > { %1370 = vpow2.f32 %v785_v7  ;;  %v850_v9 = vsel %vm637_vm2, %v1369_v8, 0.0 }
 0x29f   : > { %851 = vadd.xlane.f32.xlu0 %v850_v9 }
 0x2a1   : > { %v557_v10 = vpop.permute.xlu2 %556 }
 0x2a2   : > { %562 = vst.msk [vmem:[#allocation2 + $0x14] sm:$0xf] %vm540_vm1, %v557_v10  ;;  %v1272_v10 = vld [vmem:[#allocation4] sm:$0xff] }
 0x2a4   : > { %v1371_v11 = vpop.eup %1370 }
 0x2a5   : > { %v787_v12 = vsel %vm637_vm2, %v1371_v11, 0.0 }
 0x2a7   : > { %788 = vadd.xlane.f32.xlu0 %v787_v12 }
 0x2a9   : > { %v571_v13 = vpop.permute.xlu2 %570  ;;  %v695_v14 = vld [vmem:[#allocation2 + $0x14] sm:$0xf] }
 0x2aa   : > { %576 = vst.msk [vmem:[#allocation2 + $0x18] sm:$0xf] %vm540_vm1, %v571_v13  ;;  %v585_v15 = vpop.permute.xlu1 %584  ;;  %v734_v16 = vsel %vm672_vm3, %v695_v14, 0  ;;  %v1276_v14 = vld [vmem:[%s1806_s7 + $0x10] sm:$0xff] }
 0x2ab   : > { %590 = vst.msk [vmem:[#allocation2 + $0x1c] sm:$0xf] %vm540_vm1, %v585_v15  ;;  %743 = vmatpush.bf16.msrb.mxu2 %v734_v16 }
 0x2b1   : > { %v759_v17 = vld [vmem:[#allocation2 + $0x18] sm:$0xf] }
 0x2b2   : > { %v797_v18 = vsel %vm672_vm3, %v759_v17, 0  ;;  %v822_v19 = vld [vmem:[#allocation2 + $0x1c] sm:$0xf] }
 0x2b3   : > { %806 = vmatpush.bf16.msra.mxu0 %v797_v18  ;;  %v860_v20 = vsel %vm672_vm3, %v822_v19, 0 }
 0x2b4   : > { %869 = vmatpush.bf16.msra.mxu2 %v860_v20 }
 0x2fb   : > { %v726_v21 = vpop.xlane.xlu0 %725 }
 0x2fc   : > { %1372 = vrcp.f32 %v726_v21 }
 0x302   : > { %v1373_v22 = vpop.eup %1372 }
 0x303   : > { %v728_v23 = vmul.f32 %v1373_v22, %v1365_v61  ;;  %v665_v24 = vpop.xlane.xlu0 %664  ;;  %v1511_v61 = vmov 32.0   ;;  %v1358_v22 = vld [vmem:[%s1808_s9] ss:$0 sm:$0xff] }
 0x304   : > { %1374 = vrcp.f32 %v665_v24  ;;  %v1359_v24 = vld [vmem:[%s1809_s10] ss:$0 sm:$0xff] }
 0x305   : > { %v729_v25 = vpack.c.bf16 %v728_v23, %v728_v23 }
 0x307   : > { %1222 = vmatmul.msk.bf16.vlgmr.msrb.gmra.mxu2 %vm637_vm2, %v729_v25 }
 0x30a   : > { %v1375_v26 = vpop.eup %1374 }
 0x30b   : > { %v667_v27 = vmul.f32 %v1375_v26, %v1367_v63 }
 0x30d   : > { %v668_v28 = vpack.c.bf16 %v667_v27, %v667_v27 }
 0x30f   : > { %1220 = vmatmul.msk.bf16.vlgmr.msrb.gmra.mxu0 %vm637_vm2, %v668_v28 }
 0x312   : > { %v852_v29 = vpop.xlane.xlu0 %851 }
 0x313   : > { %1376 = vrcp.f32 %v852_v29  ;;  %v1275_v29 = vld [vmem:[%s1806_s7 + $0x8] sm:$0xff] }
 0x319   : > { %v1377_v30 = vpop.eup %1376 }
 0x31a   : > { %v854_v31 = vmul.f32 %v1377_v30, %v1369_v8  ;;  %v789_v32 = vpop.xlane.xlu0 %788  ;;  %v1274_v30 = vld [vmem:[%s1806_s7] sm:$0xff] }
 0x31b   : > { %1378 = vrcp.f32 %v789_v32 }
 0x31c   : > { %v855_v33 = vpack.c.bf16 %v854_v31, %v854_v31  ;;  %1380 = vrcp.f32 %v1511_v61  ;;  %v1360_v31 = vld [vmem:[%s1805_s6] ss:$0 sm:$0xff] }
 0x31e   : > { %1226 = vmatmul.msk.bf16.vlgmr.msra.gmra.mxu2 %vm637_vm2, %v855_v33 }
 0x321   : > { %v1379_v34 = vpop.eup %1378 }
 0x322   : > { %v791_v35 = vmul.f32 %v1379_v34, %v1371_v11  ;;  %v1381_v62 = vpop.eup %1380  ;;  %v1277_v11 = vld [vmem:[%s1806_s7 + $0x18] sm:$0xff] }
 0x323   : > { %v926_v63 = vmul.f32 32.0, %v1381_v62  ;;  %vm930_vm7 = vweird.f32 %v1381_v62  ;;  %1042 = vmatpush.bf16.msrb.mxu1 %v1277_v11 }
 0x324   : > { %v792_v36 = vpack.c.bf16 %v791_v35, %v791_v35 }
 0x325   : > { %v927_v0 = vsub.f32 1.0, %v926_v63 }
 0x326   : > { %1224 = vmatmul.msk.bf16.vlgmr.msra.gmra.mxu0 %vm637_vm2, %v792_v36 }
 0x327   : > { %v928_v1 = vmul.f32 %v1381_v62, %v927_v0  ;;  %1043 = vmatpush.bf16.msrb.mxu1 %v1276_v14 }
 0x329   : > { %v929_v2 = vadd.f32 %v1381_v62, %v928_v1 }
 0x32b   : > { %v931_v3 = vsel %vm930_vm7, %v1381_v62, %v929_v2  ;;  %1044 = vmatpush.bf16.msrb.mxu1 %v1275_v29 }
 0x32f   : > { %1045 = vmatpush.bf16.msrb.mxu1 %v1274_v30 }
 0x38a   : > { %v745_v37 = vpop.f32.mrf.mxu2 }
 0x38b   : > { %v749_v38 = vpack.c.bf16 %v745_v37, %v745_v37  ;;  %v1361_v37 = vld [vmem:[%s1807_s8] ss:$0 sm:$0xff] }
 0x38c   : > { %v685_v39 = vpop.f32.mrf.mxu0 }
 0x38d   : > { %v689_v40 = vpack.c.bf16 %v685_v39, %v685_v39  ;;  %751 = vrot.lane.b32.xlu2 %v749_v38, %s1508_s25 }
 0x38f   : > { %691 = vst.msk [vmem:[#allocation3] sm:$0xf] %vm540_vm1, %v689_v40 }
 0x392   : > { %v747_v41 = vpop.f32.mrf.mxu2 }
 0x394   : > { %v687_v42 = vpop.f32.mrf.mxu0 }
 0x3a1   : > { %v871_v43 = vpop.f32.mrf.mxu2 }
 0x3a2   : > { %v875_v44 = vpack.c.bf16 %v871_v43, %v871_v43 }
 0x3a3   : > { %v808_v45 = vpop.f32.mrf.mxu0 }
 0x3a4   : > { %v812_v46 = vpack.c.bf16 %v808_v45, %v808_v45  ;;  %877 = vrot.lane.b32.xlu1 %v875_v44, %s1509_s17 }
 0x3a6   : > { %814 = vrot.lane.b32.xlu0 %v812_v46, %s1510_s14  ;;  %s462_s14 = scalar_lea.vmem [#allocation7], %s1198_s16  ;;  %s1436_s16 = scalar_lea.hbm %s1812_s13, 16 }
 0x3a7   : > { %s1099_s28 = sshll.u32 %s462_s14, 4  ;;  %p1438_p6 = scmp.lt.s32.totalorder %s1436_s16, %s1432_s15  ;;  %s1100_s28 = int_to_ptr.vmem [resolvable:$true] %s1099_s28 }
 0x3a9   : > { %v873_v47 = vpop.f32.mrf.mxu2  ;;  %p1439_p7 = por %p1438_p6, %p1437_p5 }
 0x3ab   : > { %v810_v48 = vpop.f32.mrf.mxu0  ;;  %p1440_p9 = pnand %p1439_p7, %p1435_p3 }
 0x3e7   : > { %v752_v49 = vpop.permute.xlu2 %751 }
 0x3e8   : > { %755 = vst.msk [vmem:[#allocation3] sm:$0xf] %vm754_vm4, %v752_v49 }
 0x416   : > { %v878_v53 = vpop.permute.xlu1 %877 }
 0x418   : > { %v815_v52 = vpop.permute.xlu0 %814 }
 0x419   : > { %818 = vst.msk [vmem:[#allocation3] sm:$0xf] %vm817_vm5, %v815_v52 }
 0x41a   : > { %881 = vst.msk [vmem:[#allocation3] sm:$0xf] %vm880_vm6, %v878_v53 }
 0x421   : > { %v882_v54 = vld [vmem:[#allocation3] sm:$0xf] }
 0x422   : > { %1235 = vmatmul.msk.bf16.vlgmr.msra.gmra.mxu3 %vm500_vm0, %v882_v54 }
 0x4a5   : > { %v915_v56 = vpop.f32.mrf.mxu3 }
 0x4a6   : > { %v916_v57 = vadd.f32 %v1357_v55, %v915_v56 }
 0x4a8   : > { %v919_v58 = vadd.f32 %v916_v57, %v1658_v4  ;;  %v1273_v4 = vld [vmem:[#allocation4 + $0x8] sm:$0xff]  ;;  %v1362_v57 = vld [vmem:[%s1810_s11] ss:$0 sm:$0xff] }
 0x4a9   : > { %989 = vmatpush.bf16.msrb.mxu0 %v1273_v4 }
 0x4aa   : > { %v922_v59 = vsel %vm500_vm0, %v919_v58, 0.0 }
 0x4ab   : > { %923 = vadd.xlane.f32.xlu2 %v922_v59 }
 0x4ad   : > { %v917_v60 = vpop.f32.mrf.mxu3  ;;  %990 = vmatpush.bf16.msrb.mxu0 %v1272_v10 }
 0x4ae   : > { %v1363_v60 = vld [vmem:[%s1811_s12] ss:$0 sm:$0xff] }
 0x51e   : > { %v924_v5 = vpop.xlane.xlu2 %923 }
 0x51f   : > { %v932_v6 = vmul.f32 %v931_v3, %v924_v5 }
 0x521   : > { %v933_v7 = vsub.f32 %v919_v58, %v932_v6 }
 0x523   : > { %v934_v8 = vmul.f32 %v933_v7, %v933_v7 }
 0x525   : > { %v935_v9 = vsel %vm500_vm0, %v934_v8, 0.0 }
 0x526   : > { %936 = vadd.xlane.f32.xlu1 %v935_v9 }
 0x599   : > { %v937_v12 = vpop.xlane.xlu1 %936 }
 0x59a   : > { %v938_v13 = vmul.f32 %v937_v12, %v931_v3 }
 0x59c   : > { %v939_v15 = vadd.f32 1e-05, %v938_v13 }
 0x59e   : > { %1382 = vrsqrt.f32 %v939_v15  ;;  %vm946_vm9 = vweird.f32 %v939_v15 }
 0x5a4   : > { %v1383_v16 = vpop.eup %1382 }
 0x5a5   : > { %v941_v17 = vmul.f32 %v1383_v16, %v939_v15  ;;  %vm947_vm8 = vweird.f32 %v1383_v16 }
 0x5a6   : > { %vm948_vm10 = vmor %vm946_vm9, %vm947_vm8 }
 0x5a7   : > { %v942_v18 = vmul.f32 %v1383_v16, %v941_v17 }
 0x5a9   : > { %v943_v19 = vmul.f32 0.5, %v942_v18 }
 0x5ab   : > { %v944_v20 = vsub.f32 1.5, %v943_v19 }
 0x5ad   : > { %v945_v21 = vmul.f32 %v1383_v16, %v944_v20 }
 0x5af   : > { %v949_v23 = vsel %vm948_vm10, %v1383_v16, %v945_v21 }
 0x5b0   : > { %v950_v25 = vmul.f32 %v949_v23, %v933_v7 }
 0x5b2   : > { %v954_v26 = vmul.f32 %v1358_v22, %v950_v25 }
 0x5b4   : > { %v958_v27 = vadd.f32 %v1359_v24, %v954_v26 }
 0x5b6   : > { %v959_v28 = vpack.c.bf16 %v958_v27, %v958_v27 }
 0x5b8   : > { %1244 = vmatmul.msk.bf16.vlgmr.msrb.gmra.mxu0 %vm500_vm0, %v959_v28 }
 0x635   : > { %v992_v32 = vpop.f32.mrf.mxu0 }
 0x636   : > { %v993_v33 = vadd.f32 %v1360_v31, %v992_v32 }
 0x638   : > { %v996_v34 = vmax.f32 %v993_v33, 0.0 }
 0x63a   : > { %v997_v35 = vpack.c.bf16 %v996_v34, %v996_v34 }
 0x63c   : > { %1261 = vmatmul.msk.bf16.vlgmr.msrb.gmra.mxu1 %vm1034_vm11, %v997_v35 }
 0x63d   : > { %v994_v36 = vpop.f32.mrf.mxu0 }
 0x6b9   : > { %v1047_v38 = vpop.f32.mrf.mxu1 }
 0x6ba   : > { %v1048_v39 = vadd.f32 %v1361_v37, %v1047_v38 }
 0x6bc   : > { %v1051_v40 = vadd.f32 %v1048_v39, %v958_v27 }
 0x6be   : > { %v1054_v41 = vsel %vm500_vm0, %v1051_v40, 0.0 }
 0x6bf   : > { %1055 = vadd.xlane.f32.xlu0 %v1054_v41 }
 0x6c1   : > { %v1049_v42 = vpop.f32.mrf.mxu1 }
 0x732   : > { %v1056_v43 = vpop.xlane.xlu0 %1055 }
 0x733   : > { %v1057_v44 = vmul.f32 %v1056_v43, %v931_v3 }
 0x735   : > { %v1058_v45 = vsub.f32 %v1051_v40, %v1057_v44 }
 0x737   : > { %v1059_v46 = vmul.f32 %v1058_v45, %v1058_v45 }
 0x739   : > { %v1060_v47 = vsel %vm500_vm0, %v1059_v46, 0.0 }
 0x73a   : > { %1061 = vadd.xlane.f32.xlu2 %v1060_v47 }
 0x7ad   : > { %v1062_v48 = vpop.xlane.xlu2 %1061 }
 0x7ae   : > { %v1063_v49 = vmul.f32 %v1062_v48, %v931_v3 }
 0x7b0   : > { %v1064_v50 = vadd.f32 1e-05, %v1063_v49 }
 0x7b2   : > { %1384 = vrsqrt.f32 %v1064_v50  ;;  %vm1071_vm13 = vweird.f32 %v1064_v50 }
 0x7b8   : > { %v1385_v51 = vpop.eup %1384 }
 0x7b9   : > { %v1066_v52 = vmul.f32 %v1385_v51, %v1064_v50  ;;  %vm1072_vm12 = vweird.f32 %v1385_v51 }
 0x7ba   : > { %vm1073_vm14 = vmor %vm1071_vm13, %vm1072_vm12 }
 0x7bb   : > { %v1067_v53 = vmul.f32 %v1385_v51, %v1066_v52 }
 0x7bd   : > { %v1068_v54 = vmul.f32 0.5, %v1067_v53 }
 0x7bf   : > { %v1069_v55 = vsub.f32 1.5, %v1068_v54 }
 0x7c1   : > { %v1070_v56 = vmul.f32 %v1385_v51, %v1069_v55 }
 0x7c3   : > { %v1074_v58 = vsel %vm1073_vm14, %v1385_v51, %v1070_v56 }
 0x7c4   : > { %v1075_v59 = vmul.f32 %v1074_v58, %v1058_v45 }
 0x7c6   : > { %v1079_v61 = vmul.f32 %v1362_v57, %v1075_v59 }
 0x7c8   : > { %v1083_v62 = vadd.f32 %v1363_v60, %v1079_v61 }
 0x7ca   : > { %1084 = vst.msk [vmem:[%s462_s14] sm:$0xff] %vm500_vm0, %v1083_v62 }
 0x7cb   : > { %1443 = shalt.err (!%p1440_p9)
}
 0x7cc   : > { %1282 = dma.vmem_to_hbm [thread:$0]  (%p1622_p4), %s1100_s28, 128, %s1102_s0, %s1086_s5  }
 0x7cd PF: > { %s1825_s22 = sld [smem:[#allocation10_spill]]  ;;  %p1294_p10 = scmp.ge.s32.totalorder %s1498_s30, 2 }
 0x7cf   : > { %p1289_p11 = pnand %p1294_p10, %p1629_p8 }
 0x7d1   : > { %p1290_p12 = pneg %p1289_p11 }
 0x7d3   : > { %s1113_s17 = sand.u32 1, %s1825_s22  }
 0x7d4   : > { %s1114_s14 = scalar_lea.sflag [#allocation6], %s1113_s17 }
 0x7d5   : > { %1473 = dma.done.wait (%p1290_p12), %s1114_s14, 128  }
 0x7d6   : > { %1475 = vsyncadd (%p1290_p12), %s1114_s14, 4294967168  ;;  %s27_s30 = sadd.s32 1, %s1498_s30   ;;  %s1826_s28 = sld [smem:[#allocation11_spill]] }
 0x7d7   : > { %p24_p13 = scmp.ge.s32.totalorder %s27_s30, 4   ;;  %s1827_s29 = sld [smem:[#allocation12_spill]] }
 0x7d8   : > { %s1828_s25 = smov %s1482_s26  ;;  %s1829_s26 = smov %s1486_s27 }
 0x7d9   : > { %s1830_s27 = smov %s1635_s21  ;;  %26 = sbr.rel (!%p24_p13) target bundleno = 8 (0x8), region = 131 }
 0x7de   :  { %1120 = vsyncpa [#allocation5], 1 }
 0x7df   :  { %1122 = vsyncpa [#allocation5 + $0x1], 1 }
 0x7e0   :  { %1123 = vsyncpa [#allocation6], 1 }
 0x7e1   :  { %1125 = vsyncpa [#allocation6 + $0x1], 1 }

</bundles_post_ra>
